<compile_context>
chip_gen: v7x
topology: tpu7x:2x2x1
jax: 0.10.0
libtpu: 0.0.40
codegen_flags: <defaults>
</compile_context>

<pallas_src>
import functools

import jax
import jax.numpy as jnp
from jax.experimental import pallas as pl
from jax.experimental.pallas import tpu as pltpu

H = 256       # hidden size fixed by the module
N_HEADS = 5
MAX_B_TILE = 512


def _sigmoid(x):
    # tanh-form sigmoid: stays on the EUP, no divide. dtype-preserving.
    return 0.5 * (jnp.tanh(0.5 * x) + 1.0)


def mm_kernel(vx_ref, tx_ref,
              wv_ref, bv_ref,        # vfc:   (vdim,256) bf16, (1,256) f32
              wih_ref,               # lstm W_ih^T, f-gate removed: (tdim,3H) bf16 [i|g|o]
              wmv_ref, wmh_ref,      # mfc1^T split: (256,256) bf16 each (visual | text)
              bm_ref,                # (1,256) f32
              wc_ref, bc_ref,        # heads:  (256,5) bf16, (1,5) f32
              out_ref,               # (B_TILE, 5) f32
              *, bf16_elementwise):
    ew = jnp.bfloat16 if bf16_elementwise else jnp.float32

    # ---- visual branch: ReLU(vfc(vx)) ----
    vx = vx_ref[...].astype(jnp.bfloat16)
    v_h = jnp.maximum(
        jnp.dot(vx, wv_ref[...], preferred_element_type=jnp.float32) + bv_ref[...],
        0.0)                                                          # (B, 256) f32
    v_b = v_h.astype(jnp.bfloat16)

    # ---- text branch: single-step LSTM cell (i|g|o only; f-gate is dead) ----
    tx = tx_ref[...].astype(jnp.bfloat16)
    gates = jnp.dot(tx, wih_ref[...],
                    preferred_element_type=jnp.float32).astype(ew)   # (B, 3H)
    i_g = _sigmoid(gates[:, 0 * H:1 * H])
    g_g = jnp.tanh(gates[:, 1 * H:2 * H])
    o_g = _sigmoid(gates[:, 2 * H:3 * H])
    h = o_g * jnp.tanh(i_g * g_g)                                     # (B, 256) ew
    h_b = h.astype(jnp.bfloat16)

    # ---- fusion: ReLU(mfc1([v_h | h])) as two K=256 matmuls (no concat) ----
    m = jnp.maximum(
        jnp.dot(v_b, wmv_ref[...], preferred_element_type=jnp.float32)
        + jnp.dot(h_b, wmh_ref[...], preferred_element_type=jnp.float32)
        + bm_ref[...],
        0.0)                                                          # (B, 256) f32

    # ---- five heads stacked into one 256->5 matmul ----
    logits = jnp.dot(m.astype(jnp.bfloat16), wc_ref[...],
                     preferred_element_type=jnp.float32) + bc_ref[...]
    out_ref[...] = _sigmoid(logits)                                   # (B, 5) f32


def prepare_params(params):
    """One-time host-side weight preparation (transpose / split / f-gate drop / bf16)."""
    wv_t = params["vfc_w"].T.astype(jnp.bfloat16)                     # (vdim, 256)
    bv = params["vfc_b"][None, :].astype(jnp.float32)                 # (1, 256)

    wih = params["lstm_w_ih"]                                         # (4H, tdim), gates i,f,g,o
    wih_igo = jnp.concatenate(                                        # drop dead f-gate rows
        [wih[0:H], wih[2 * H:3 * H], wih[3 * H:4 * H]], axis=0)       # (3H, tdim)
    wih_t = wih_igo.T.astype(jnp.bfloat16)                            # (tdim, 3H)

    wm = params["mfc1_w"]                                             # (256, 512) [visual|text]
    wm_v = wm[:, :H].T.astype(jnp.bfloat16)                           # (256, 256) visual half
    wm_h = wm[:, H:].T.astype(jnp.bfloat16)                           # (256, 256) text half
    bm = params["mfc1_b"][None, :].astype(jnp.float32)                # (1, 256)

    wc = jnp.stack([params[f"cf{k}_w"][0] for k in range(1, 6)],
                   axis=1).astype(jnp.bfloat16)                       # (256, 5)
    bc = jnp.stack([params[f"cf{k}_b"][0]
                    for k in range(1, 6)])[None, :].astype(jnp.float32)  # (1, 5)

    return (wv_t, bv, wih_t, wm_v, wm_h, bm, wc, bc)


def _round_up(x, m):
    return ((x + m - 1) // m) * m


def _cdiv(a, b):
    return (a + b - 1) // b


def _chip_flags():
    """(bf16 VPU/EUP available, 2 TensorCores per chip) from device_kind."""
    try:
        kind = jax.devices()[0].device_kind.lower()
    except Exception:
        kind = ""
    bf16_ew = ("v6" in kind) or ("v7" in kind)    # v5e has no bf16 VPU/EUP
    two_cores = "v7" in kind                      # v7x: 2 TCs/chip
    return bf16_ew, two_cores


def _select_tile(B, two_cores):
    n = _cdiv(B, MAX_B_TILE)
    if two_cores and B >= 16:
        n = max(n, 2)
        if n % 2:
            n += 1                                 # even #programs across 2 TCs
    b_tile = _round_up(_cdiv(B, n), 8)
    b_pad = _round_up(B, b_tile)
    return b_tile, b_pad


@jax.jit
def mm_network_forward(vx, tx, prep):
    wv_t, bv, wih_t, wm_v, wm_h, bm, wc, bc = prep
    B, vdim = vx.shape
    tdim = tx.shape[1]

    bf16_ew, two_cores = _chip_flags()
    b_tile, b_pad = _select_tile(B, two_cores)
    if b_pad != B:                                 # at most a few rows of padding
        vx = jnp.pad(vx, ((0, b_pad - B), (0, 0)))
        tx = jnp.pad(tx, ((0, b_pad - B), (0, 0)))
    grid = (b_pad // b_tile,)

    batch_map = lambda i: (i, 0)
    const_map = lambda i: (0, 0)

    weights = (wv_t, bv, wih_t, wm_v, wm_h, bm, wc, bc)
    in_specs = [
        pl.BlockSpec((b_tile, vdim), batch_map),   # vx
        pl.BlockSpec((b_tile, tdim), batch_map),   # tx
    ] + [pl.BlockSpec(w.shape, const_map) for w in weights]  # VMEM-resident weights

    # Advisory cost estimate so XLA can overlap surrounding ops.
    flops = 2 * B * (vdim * H + tdim * 3 * H + 2 * H * H + H * N_HEADS)
    transcendentals = B * (4 * H + N_HEADS)
    w_bytes = sum(int(w.size) * w.dtype.itemsize for w in weights)
    bytes_accessed = (B * (vdim + tdim) * 4 + B * N_HEADS * 4 + w_bytes)
    cost = pl.CostEstimate(flops=flops, transcendentals=transcendentals,
                           bytes_accessed=bytes_accessed)

    # Only raise the scoped-VMEM limit if the footprint actually needs it.
    est_vmem = (2 * b_tile * (vdim + tdim + N_HEADS) * 4      # double-buffered I/O tiles
                + 2 * w_bytes                                  # weight blocks
                + 12 * b_tile * H * 4)                         # intermediates slack
    vmem_limit = None
    if est_vmem > (32 << 20):
        vmem_limit = min(est_vmem + (4 << 20), 100 << 20)

    out = pl.pallas_call(
        functools.partial(mm_kernel, bf16_elementwise=bf16_ew),
        grid=grid,
        in_specs=in_specs,
        out_specs=pl.BlockSpec((b_tile, N_HEADS), batch_map),
        out_shape=jax.ShapeDtypeStruct((b_pad, N_HEADS), jnp.float32),
        compiler_params=pltpu.CompilerParams(
            dimension_semantics=("parallel",),
            vmem_limit_bytes=vmem_limit),
        cost_estimate=cost,
    )(vx, tx, *weights)

    out = out[:B]
    # split into the 5 (B, 1) outputs like the torch module returns
    return tuple(out[:, k:k + 1] for k in range(N_HEADS))


def init_params(key, vdim, tdim):
    ks = jax.random.split(key, 16)
    s = 0.05
    p = {
        "vfc_w":     s * jax.random.normal(ks[0], (H, vdim), jnp.float32),
        "vfc_b":     s * jax.random.normal(ks[1], (H,), jnp.float32),
        "lstm_w_ih": s * jax.random.normal(ks[2], (4 * H, tdim), jnp.float32),
        # lstm_w_hh ((4H, H)) exists in the module but is mathematically unused
        # for a length-1 sequence with zero initial state.
        "mfc1_w":    s * jax.random.normal(ks[3], (H, 2 * H), jnp.float32),
        "mfc1_b":    s * jax.random.normal(ks[4], (H,), jnp.float32),
    }
    for k in range(1, 6):
        p[f"cf{k}_w"] = s * jax.random.normal(ks[4 + k], (1, H), jnp.float32)
        p[f"cf{k}_b"] = s * jax.random.normal(ks[9 + k], (1,), jnp.float32)
    return p


def _reference(vx, tx, params):
    """Pure-JAX f32 reference matching the torch forward (eval mode)."""
    v_h = jax.nn.relu(vx @ params["vfc_w"].T + params["vfc_b"])
    gates = tx @ params["lstm_w_ih"].T                      # (B, 4H) gates i,f,g,o
    i_g = jax.nn.sigmoid(gates[:, 0 * H:1 * H])
    g_g = jnp.tanh(gates[:, 2 * H:3 * H])
    o_g = jax.nn.sigmoid(gates[:, 3 * H:4 * H])
    h = o_g * jnp.tanh(i_g * g_g)                           # f-gate * c0(=0) vanishes
    m = jax.nn.relu(jnp.concatenate([v_h, h], axis=1) @ params["mfc1_w"].T
                    + params["mfc1_b"])
    return tuple(jax.nn.sigmoid(m @ params[f"cf{k}_w"].T + params[f"cf{k}_b"])
                 for k in range(1, 6))


if __name__ == "__main__":
    B, vdim, tdim = 8, 32, 48
    key = jax.random.PRNGKey(0)
    k_v, k_t, k_p = jax.random.split(key, 3)
    vx = jax.random.normal(k_v, (B, vdim), jnp.float32)
    tx = jax.random.normal(k_t, (B, tdim), jnp.float32)
    params = init_params(k_p, vdim, tdim)

    prep = prepare_params(params)                 # one-time weight preparation
    outs = mm_network_forward(vx, tx, prep)
    outs = jax.block_until_ready(outs)

    refs = _reference(vx, tx, params)

    assert len(outs) == 5
    for o, r in zip(outs, refs):
        assert o.shape == (B, 1)
        assert bool(jnp.all((o >= 0.0) & (o <= 1.0)))
        assert bool(jnp.all(jnp.abs(o - r) < 3e-2))   # bf16-matmul tolerance
    print("KERNEL_OK")
</pallas_src>

<mosaic_0001>
module attributes {stable_mosaic.version = 11 : i64} {
  func.func @mm_kernel(%arg0: i32, %arg1: memref<8x32xf32, #tpu.memory_space<vmem>>, %arg2: memref<8x48xf32, #tpu.memory_space<vmem>>, %arg3: memref<32x256xbf16, #tpu.memory_space<vmem>>, %arg4: memref<1x256xf32, #tpu.memory_space<vmem>>, %arg5: memref<48x768xbf16, #tpu.memory_space<vmem>>, %arg6: memref<256x256xbf16, #tpu.memory_space<vmem>>, %arg7: memref<256x256xbf16, #tpu.memory_space<vmem>>, %arg8: memref<1x256xf32, #tpu.memory_space<vmem>>, %arg9: memref<256x5xbf16, #tpu.memory_space<vmem>>, %arg10: memref<1x5xf32, #tpu.memory_space<vmem>>, %arg11: memref<8x5xf32, #tpu.memory_space<vmem>>) attributes {dimension_semantics = [#tpu.dimension_semantics<parallel>], iteration_bounds = array<i64: 1>, scalar_prefetch = 0 : i64, scratch_operands = 0 : i64, tpu.core_type = #tpu.core_type<tc>, window_params = [{transform_indices = @transform_0, window_bounds = array<i64: 8, 32>}, {transform_indices = @transform_1, window_bounds = array<i64: 8, 48>}, {pipeline_mode = #tpu.pipeline_mode<synchronous>, transform_indices = @transform_2, window_bounds = array<i64: 32, 256>}, {pipeline_mode = #tpu.pipeline_mode<synchronous>, transform_indices = @transform_3, window_bounds = array<i64: 1, 256>}, {pipeline_mode = #tpu.pipeline_mode<synchronous>, transform_indices = @transform_4, window_bounds = array<i64: 48, 768>}, {pipeline_mode = #tpu.pipeline_mode<synchronous>, transform_indices = @transform_5, window_bounds = array<i64: 256, 256>}, {pipeline_mode = #tpu.pipeline_mode<synchronous>, transform_indices = @transform_6, window_bounds = array<i64: 256, 256>}, {pipeline_mode = #tpu.pipeline_mode<synchronous>, transform_indices = @transform_7, window_bounds = array<i64: 1, 256>}, {pipeline_mode = #tpu.pipeline_mode<synchronous>, transform_indices = @transform_8, window_bounds = array<i64: 256, 5>}, {pipeline_mode = #tpu.pipeline_mode<synchronous>, transform_indices = @transform_9, window_bounds = array<i64: 1, 5>}, {transform_indices = @transform_10, window_bounds = array<i64: 8, 5>}]} {
    %c0 = arith.constant 0 : index
    %c0_0 = arith.constant 0 : index
    %0 = vector.load %arg1[%c0, %c0_0] : memref<8x32xf32, #tpu.memory_space<vmem>>, vector<8x32xf32>
    %1 = arith.truncf %0 : vector<8x32xf32> to vector<8x32xbf16>
    %c0_1 = arith.constant 0 : index
    %c0_2 = arith.constant 0 : index
    %2 = vector.load %arg3[%c0_1, %c0_2] : memref<32x256xbf16, #tpu.memory_space<vmem>>, vector<32x256xbf16>
    %cst = arith.constant dense<0.000000e+00> : vector<8x256xf32>
    %3 = tpu.matmul %1, %2, %cst {dimension_numbers = #tpu.dot_dimension_numbers<[1], [0], [0], [1], [0, 0, 1, 1], [], []>} : vector<8x32xbf16>, vector<32x256xbf16>, vector<8x256xf32> -> vector<8x256xf32>
    %c0_3 = arith.constant 0 : index
    %c0_4 = arith.constant 0 : index
    %4 = vector.load %arg4[%c0_3, %c0_4] : memref<1x256xf32, #tpu.memory_space<vmem>>, vector<1x256xf32>
    %5 = vector.broadcast %4 : vector<1x256xf32> to vector<8x256xf32>
    %6 = arith.addf %3, %5 : vector<8x256xf32>
    %cst_5 = arith.constant 0.000000e+00 : f32
    %7 = vector.broadcast %cst_5 : f32 to vector<8x256xf32>
    %8 = arith.maximumf %6, %7 : vector<8x256xf32>
    %9 = arith.truncf %8 : vector<8x256xf32> to vector<8x256xbf16>
    %c0_6 = arith.constant 0 : index
    %c0_7 = arith.constant 0 : index
    %10 = vector.load %arg2[%c0_6, %c0_7] : memref<8x48xf32, #tpu.memory_space<vmem>>, vector<8x48xf32>
    %11 = arith.truncf %10 : vector<8x48xf32> to vector<8x48xbf16>
    %c0_8 = arith.constant 0 : index
    %c0_9 = arith.constant 0 : index
    %12 = vector.load %arg5[%c0_8, %c0_9] : memref<48x768xbf16, #tpu.memory_space<vmem>>, vector<48x768xbf16>
    %cst_10 = arith.constant dense<0.000000e+00> : vector<8x768xf32>
    %13 = tpu.matmul %11, %12, %cst_10 {dimension_numbers = #tpu.dot_dimension_numbers<[1], [0], [0], [1], [0, 0, 1, 1], [], []>} : vector<8x48xbf16>, vector<48x768xbf16>, vector<8x768xf32> -> vector<8x768xf32>
    %14 = vector.extract_strided_slice %13 {offsets = [0, 0], sizes = [8, 256], strides = [1, 1]} : vector<8x768xf32> to vector<8x256xf32>
    %cst_11 = arith.constant 5.000000e-01 : f32
    %15 = vector.broadcast %cst_11 : f32 to vector<8x256xf32>
    %16 = arith.mulf %15, %14 : vector<8x256xf32>
    %17 = math.tanh %16 : vector<8x256xf32>
    %cst_12 = arith.constant 1.000000e+00 : f32
    %18 = vector.broadcast %cst_12 : f32 to vector<8x256xf32>
    %19 = arith.addf %17, %18 : vector<8x256xf32>
    %cst_13 = arith.constant 5.000000e-01 : f32
    %20 = vector.broadcast %cst_13 : f32 to vector<8x256xf32>
    %21 = arith.mulf %20, %19 : vector<8x256xf32>
    %22 = vector.extract_strided_slice %13 {offsets = [0, 256], sizes = [8, 256], strides = [1, 1]} : vector<8x768xf32> to vector<8x256xf32>
    %23 = math.tanh %22 : vector<8x256xf32>
    %24 = vector.extract_strided_slice %13 {offsets = [0, 512], sizes = [8, 256], strides = [1, 1]} : vector<8x768xf32> to vector<8x256xf32>
    %cst_14 = arith.constant 5.000000e-01 : f32
    %25 = vector.broadcast %cst_14 : f32 to vector<8x256xf32>
    %26 = arith.mulf %25, %24 : vector<8x256xf32>
    %27 = math.tanh %26 : vector<8x256xf32>
    %cst_15 = arith.constant 1.000000e+00 : f32
    %28 = vector.broadcast %cst_15 : f32 to vector<8x256xf32>
    %29 = arith.addf %27, %28 : vector<8x256xf32>
    %cst_16 = arith.constant 5.000000e-01 : f32
    %30 = vector.broadcast %cst_16 : f32 to vector<8x256xf32>
    %31 = arith.mulf %30, %29 : vector<8x256xf32>
    %32 = arith.mulf %21, %23 : vector<8x256xf32>
    %33 = math.tanh %32 : vector<8x256xf32>
    %34 = arith.mulf %31, %33 : vector<8x256xf32>
    %35 = arith.truncf %34 : vector<8x256xf32> to vector<8x256xbf16>
    %c0_17 = arith.constant 0 : index
    %c0_18 = arith.constant 0 : index
    %36 = vector.load %arg6[%c0_17, %c0_18] : memref<256x256xbf16, #tpu.memory_space<vmem>>, vector<256x256xbf16>
    %cst_19 = arith.constant dense<0.000000e+00> : vector<8x256xf32>
    %37 = tpu.matmul %9, %36, %cst_19 {dimension_numbers = #tpu.dot_dimension_numbers<[1], [0], [0], [1], [0, 0, 1, 1], [], []>} : vector<8x256xbf16>, vector<256x256xbf16>, vector<8x256xf32> -> vector<8x256xf32>
    %c0_20 = arith.constant 0 : index
    %c0_21 = arith.constant 0 : index
    %38 = vector.load %arg7[%c0_20, %c0_21] : memref<256x256xbf16, #tpu.memory_space<vmem>>, vector<256x256xbf16>
    %cst_22 = arith.constant dense<0.000000e+00> : vector<8x256xf32>
    %39 = tpu.matmul %35, %38, %cst_22 {dimension_numbers = #tpu.dot_dimension_numbers<[1], [0], [0], [1], [0, 0, 1, 1], [], []>} : vector<8x256xbf16>, vector<256x256xbf16>, vector<8x256xf32> -> vector<8x256xf32>
    %40 = arith.addf %37, %39 : vector<8x256xf32>
    %c0_23 = arith.constant 0 : index
    %c0_24 = arith.constant 0 : index
    %41 = vector.load %arg8[%c0_23, %c0_24] : memref<1x256xf32, #tpu.memory_space<vmem>>, vector<1x256xf32>
    %42 = vector.broadcast %41 : vector<1x256xf32> to vector<8x256xf32>
    %43 = arith.addf %40, %42 : vector<8x256xf32>
    %cst_25 = arith.constant 0.000000e+00 : f32
    %44 = vector.broadcast %cst_25 : f32 to vector<8x256xf32>
    %45 = arith.maximumf %43, %44 : vector<8x256xf32>
    %46 = arith.truncf %45 : vector<8x256xf32> to vector<8x256xbf16>
    %c0_26 = arith.constant 0 : index
    %c0_27 = arith.constant 0 : index
    %47 = vector.load %arg9[%c0_26, %c0_27] : memref<256x5xbf16, #tpu.memory_space<vmem>>, vector<256x5xbf16>
    %cst_28 = arith.constant dense<0.000000e+00> : vector<8x5xf32>
    %48 = tpu.matmul %46, %47, %cst_28 {dimension_numbers = #tpu.dot_dimension_numbers<[1], [0], [0], [1], [0, 0, 1, 1], [], []>} : vector<8x256xbf16>, vector<256x5xbf16>, vector<8x5xf32> -> vector<8x5xf32>
    %c0_29 = arith.constant 0 : index
    %c0_30 = arith.constant 0 : index
    %49 = vector.load %arg10[%c0_29, %c0_30] : memref<1x5xf32, #tpu.memory_space<vmem>>, vector<1x5xf32>
    %50 = vector.broadcast %49 : vector<1x5xf32> to vector<8x5xf32>
    %51 = arith.addf %48, %50 : vector<8x5xf32>
    %cst_31 = arith.constant 5.000000e-01 : f32
    %52 = vector.broadcast %cst_31 : f32 to vector<8x5xf32>
    %53 = arith.mulf %52, %51 : vector<8x5xf32>
    %54 = math.tanh %53 : vector<8x5xf32>
    %cst_32 = arith.constant 1.000000e+00 : f32
    %55 = vector.broadcast %cst_32 : f32 to vector<8x5xf32>
    %56 = arith.addf %54, %55 : vector<8x5xf32>
    %cst_33 = arith.constant 5.000000e-01 : f32
    %57 = vector.broadcast %cst_33 : f32 to vector<8x5xf32>
    %58 = arith.mulf %57, %56 : vector<8x5xf32>
    %c0_34 = arith.constant 0 : index
    %c0_35 = arith.constant 0 : index
    %59 = vector.load %arg11[%c0_34, %c0_35] : memref<8x5xf32, #tpu.memory_space<vmem>>, vector<8x5xf32>
    tpu.vector_store %arg11[%c0_34, %c0_35], %58 {strides = array<i32>} : memref<8x5xf32, #tpu.memory_space<vmem>>, vector<8x5xf32>,
    return
  }
  func.func @transform_0(%arg0: i32) -> (i32, i32) {
    %c0_i32 = arith.constant 0 : i32
    %c0_i32_0 = arith.constant 0 : i32
    return %arg0, %c0_i32 : i32, i32
  }
  func.func @transform_1(%arg0: i32) -> (i32, i32) {
    %c0_i32 = arith.constant 0 : i32
    %c0_i32_0 = arith.constant 0 : i32
    return %arg0, %c0_i32 : i32, i32
  }
  func.func @transform_2(%arg0: i32) -> (i32, i32) {
    %c0_i32 = arith.constant 0 : i32
    %c0_i32_0 = arith.constant 0 : i32
    %c0_i32_1 = arith.constant 0 : i32
    return %c0_i32, %c0_i32_0 : i32, i32
  }
  func.func @transform_3(%arg0: i32) -> (i32, i32) {
    %c0_i32 = arith.constant 0 : i32
    %c0_i32_0 = arith.constant 0 : i32
    %c0_i32_1 = arith.constant 0 : i32
    return %c0_i32, %c0_i32_0 : i32, i32
  }
  func.func @transform_4(%arg0: i32) -> (i32, i32) {
    %c0_i32 = arith.constant 0 : i32
    %c0_i32_0 = arith.constant 0 : i32
    %c0_i32_1 = arith.constant 0 : i32
    return %c0_i32, %c0_i32_0 : i32, i32
  }
  func.func @transform_5(%arg0: i32) -> (i32, i32) {
    %c0_i32 = arith.constant 0 : i32
    %c0_i32_0 = arith.constant 0 : i32
    %c0_i32_1 = arith.constant 0 : i32
    return %c0_i32, %c0_i32_0 : i32, i32
  }
  func.func @transform_6(%arg0: i32) -> (i32, i32) {
    %c0_i32 = arith.constant 0 : i32
    %c0_i32_0 = arith.constant 0 : i32
    %c0_i32_1 = arith.constant 0 : i32
    return %c0_i32, %c0_i32_0 : i32, i32
  }
  func.func @transform_7(%arg0: i32) -> (i32, i32) {
    %c0_i32 = arith.constant 0 : i32
    %c0_i32_0 = arith.constant 0 : i32
    %c0_i32_1 = arith.constant 0 : i32
    return %c0_i32, %c0_i32_0 : i32, i32
  }
  func.func @transform_8(%arg0: i32) -> (i32, i32) {
    %c0_i32 = arith.constant 0 : i32
    %c0_i32_0 = arith.constant 0 : i32
    %c0_i32_1 = arith.constant 0 : i32
    return %c0_i32, %c0_i32_0 : i32, i32
  }
  func.func @transform_9(%arg0: i32) -> (i32, i32) {
    %c0_i32 = arith.constant 0 : i32
    %c0_i32_0 = arith.constant 0 : i32
    %c0_i32_1 = arith.constant 0 : i32
    return %c0_i32, %c0_i32_0 : i32, i32
  }
  func.func @transform_10(%arg0: i32) -> (i32, i32) {
    %c0_i32 = arith.constant 0 : i32
    %c0_i32_0 = arith.constant 0 : i32
    return %arg0, %c0_i32 : i32, i32
  }
}

</mosaic_0001>

<bundles_post_ra>
// kernel: mm_network_forward.1
= control target key start
LH: loop header
LB: loop body
LE: loop exit
PB: predicated region body
PF: predicated region fallthrough
CT: control target
= control target key end

     0   :  { %15 = vsyncpa [#allocation3], 0  ;;  %s1804_s0 = inlined_call_operand.hbm [shape: f32[8,32], index: 0, kind: input, shape index: {}]   ;;  %s1805_s1 = inlined_call_operand.hbm [shape: f32[8,48], index: 1, kind: input, shape index: {}]   ;;  %s1806_s2 = inlined_call_operand.hbm [shape: bf16[32,256], index: 2, kind: input, shape index: {}]   ;;  %s1807_s3 = inlined_call_operand.vmem [shape: f32[1,256], index: 3, kind: input, shape index: {}]   ;;  %s1808_s4 = inlined_call_operand.vmem [shape: bf16[48,768], index: 4, kind: input, shape index: {}]   ;;  %s1809_s5 = inlined_call_operand.hbm [shape: bf16[256,256], index: 5, kind: input, shape index: {}]   ;;  %s1810_s6 = inlined_call_operand.hbm [shape: bf16[256,256], index: 6, kind: input, shape index: {}]   ;;  %s1811_s7 = inlined_call_operand.vmem [shape: f32[1,256], index: 7, kind: input, shape index: {}]   ;;  %s1812_s8 = inlined_call_operand.vmem [shape: bf16[256,5], index: 8, kind: input, shape index: {}]   ;;  %s1813_s9 = inlined_call_operand.vmem [shape: f32[1,5], index: 9, kind: input, shape index: {}]   ;;  %s1814_s10 = inlined_call_operand.vmem [shape: f32[8,5], index: 10, kind: output, shape index: {}]  }
   0x1   :  { %16 = vsyncpa [#allocation5], 0 }
   0x2   :  { %17 = vsyncpa [#allocation8], 0  ;;  %s1538_s13 = smov [#allocation4]   ;;  %s1422_s17 = scalar_lea.hbm %s1805_s1, 128 }
   0x3   :  { %s34_s14 = sshll.u32 %s1538_s13, 4  ;;  %p1423_p0 = scmp.ne.s32.totalorder %s1805_s1, %s1422_s17  ;;  %s35_s14 = int_to_ptr.vmem [resolvable:$true] %s34_s14 }
   0x4   :  { %p1426_p1 = scmp.lt.u32.totalorder %s1422_s17, %s1805_s1 }
   0x6   :  { %p1428_p2 = pnand %p1426_p1, %p1423_p0 }
   0x8   :  { %1431 = shalt.err (!%p1428_p2)
}
   0x9   :  { %s1432_s22 = scalar_lea.vmem %s35_s14, 128  ;;  %p1437_p4 = scmp.lt.s32.totalorder %s35_s14, %s35_s14 }
   0xa   :  { %p1433_p3 = scmp.ne.s32.totalorder %s35_s14, %s1432_s22  ;;  %p1438_p5 = scmp.lt.s32.totalorder %s1432_s22, %s1432_s22 }
   0xc   :  { %p1439_p6 = por %p1438_p5, %p1437_p4 }
   0xe   :  { %p1440_p7 = pnand %p1439_p6, %p1433_p3 }
  0x10   :  { %1443 = shalt.err (!%p1440_p7)
}
  0x11   :  { %37 = dma.hbm_to_vmem [thread:$0]  %s1805_s1, 128, %s35_s14, [#allocation5]  }
  0x12   :  { %s1539_s25 = smov [#allocation7]   ;;  %s1540_s27 = smov [#allocation2]  }
  0x13   :  { %s59_s26 = sshll.u32 %s1539_s25, 4  ;;  %s24_s28 = sshll.u32 %s1540_s27, 4  ;;  %s60_s26 = int_to_ptr.vmem [resolvable:$true] %s59_s26  ;;  %s25_s28 = int_to_ptr.vmem [resolvable:$true] %s24_s28 }
  0x14   :  { %s1444_s11 = scalar_lea.hbm %s1809_s5, 4096 }
  0x15   :  { %p1445_p8 = scmp.ne.s32.totalorder %s1809_s5, %s1444_s11  ;;  %p1448_p9 = scmp.lt.u32.totalorder %s1444_s11, %s1809_s5 }
  0x17   :  { %p1450_p10 = pnand %p1448_p9, %p1445_p8 }
  0x19   :  { %1453 = shalt.err (!%p1450_p10)
}
  0x1a   :  { %s1454_s1 = scalar_lea.vmem %s60_s26, 4096  ;;  %p1459_p12 = scmp.lt.s32.totalorder %s60_s26, %s60_s26 }
  0x1b   :  { %p1455_p11 = scmp.ne.s32.totalorder %s60_s26, %s1454_s1  ;;  %p1460_p13 = scmp.lt.s32.totalorder %s1454_s1, %s1454_s1 }
  0x1d   :  { %p1461_p0 = por %p1460_p13, %p1459_p12 }
  0x1f   :  { %p1462_p1 = pnand %p1461_p0, %p1455_p11 }
  0x21   :  { %1465 = shalt.err (!%p1462_p1)
}
  0x22   :  { %s1541_s14 = smov 128   ;;  %s1542_s17 = smov 8  }
  0x23   :  { %65 = dma.hbm_to_vmem [thread:$0]  %s1809_s5, 4096, %s60_s26, [#allocation8], %s1541_s14, %s1541_s14, %s1542_s17  }
  0x24   :  { %s1466_s22 = scalar_lea.hbm %s1804_s0, 128 }
  0x25   :  { %p1467_p2 = scmp.ne.s32.totalorder %s1804_s0, %s1466_s22  ;;  %p1470_p3 = scmp.lt.u32.totalorder %s1466_s22, %s1804_s0 }
  0x27   :  { %p1472_p4 = pnand %p1470_p3, %p1467_p2 }
  0x29   :  { %1475 = shalt.err (!%p1472_p4)
}
  0x2a   :  { %s1476_s29 = scalar_lea.vmem %s25_s28, 128  ;;  %p1481_p6 = scmp.lt.s32.totalorder %s25_s28, %s25_s28 }
  0x2b   :  { %p1477_p5 = scmp.ne.s32.totalorder %s25_s28, %s1476_s29  ;;  %p1482_p7 = scmp.lt.s32.totalorder %s1476_s29, %s1476_s29 }
  0x2d   :  { %p1483_p8 = por %p1482_p7, %p1481_p6 }
  0x2f   :  { %p1484_p9 = pnand %p1483_p8, %p1477_p5 }
  0x31   :  { %1487 = shalt.err (!%p1484_p9)
}
  0x32   :  { %27 = dma.hbm_to_vmem [thread:$0]  %s1804_s0, 128, %s25_s28, [#allocation3]  }
  0x33   :  { %s1543_s30 = smov [#allocation6]   ;;  %s1544_s12 = smov [#allocation9]  }
  0x34   :  { %s43_s11 = sshll.u32 %s1543_s30, 4  ;;  %s71_s13 = sshll.u32 %s1544_s12, 4  ;;  %s44_s11 = int_to_ptr.vmem [resolvable:$true] %s43_s11  ;;  %s72_s13 = int_to_ptr.vmem [resolvable:$true] %s71_s13 }
  0x35   :  { %s1488_s1 = scalar_lea.hbm %s1806_s2, 512 }
  0x36   :  { %p1489_p10 = scmp.ne.s32.totalorder %s1806_s2, %s1488_s1  ;;  %p1492_p11 = scmp.lt.u32.totalorder %s1488_s1, %s1806_s2 }
  0x38   :  { %p1494_p12 = pnand %p1492_p11, %p1489_p10 }
  0x3a   :  { %1497 = shalt.err (!%p1494_p12)
}
  0x3b   :  { %s1498_s0 = scalar_lea.vmem %s44_s11, 512  ;;  %p1503_p0 = scmp.lt.s32.totalorder %s44_s11, %s44_s11 }
  0x3c   :  { %p1499_p13 = scmp.ne.s32.totalorder %s44_s11, %s1498_s0  ;;  %p1504_p1 = scmp.lt.s32.totalorder %s1498_s0, %s1498_s0 }
  0x3e   :  { %p1505_p2 = por %p1504_p1, %p1503_p0 }
  0x40   :  { %p1506_p3 = pnand %p1505_p2, %p1499_p13 }
  0x42   :  { %1509 = shalt.err (!%p1506_p3)
}
  0x43   :  { %49 = dma.hbm_to_vmem [thread:$0]  %s1806_s2, 512, %s44_s11, [#allocation5], %s1541_s14, %s1541_s14, %s1542_s17  }
  0x44   :  { %s1510_s25 = scalar_lea.hbm %s1810_s6, 4096 }
  0x45   :  { %p1511_p4 = scmp.ne.s32.totalorder %s1810_s6, %s1510_s25  ;;  %p1514_p5 = scmp.lt.u32.totalorder %s1510_s25, %s1810_s6 }
  0x47   :  { %p1516_p6 = pnand %p1514_p5, %p1511_p4 }
  0x49   :  { %1519 = shalt.err (!%p1516_p6)
}
  0x4a   :  { %s1520_s30 = scalar_lea.vmem %s72_s13, 4096  ;;  %p1525_p8 = scmp.lt.s32.totalorder %s72_s13, %s72_s13 }
  0x4b   :  { %p1521_p7 = scmp.ne.s32.totalorder %s72_s13, %s1520_s30  ;;  %p1526_p9 = scmp.lt.s32.totalorder %s1520_s30, %s1520_s30 }
  0x4d   :  { %p1527_p10 = por %p1526_p9, %p1525_p8 }
  0x4f   :  { %p1528_p11 = pnand %p1527_p10, %p1521_p7 }
  0x51   :  { %1531 = shalt.err (!%p1528_p11)
}
  0x52   :  { %77 = dma.hbm_to_vmem [thread:$0]  %s1810_s6, 4096, %s72_s13, [#allocation8], %s1541_s14, %s1541_s14, %s1542_s17  }
  0x53   :  { %1532 = dma.done.wait [#allocation3], 128  }
  0x54   :  { %1533 = vsyncadd [#allocation3], 4294967168 }
  0x55   :  { %1534 = dma.done.wait [#allocation5], 640  }
  0x56   :  { %1535 = vsyncadd [#allocation5], 4294966656 }
  0x57   :  { %1536 = dma.done.wait [#allocation8], 8192  }
  0x58   :  { %1537 = vsyncadd [#allocation8], 4294959104  ;;  %v1545_v0 = vmov 0   ;;  %v1259_v1 = vld [vmem:[%s1808_s4 + $0x4] ss:$24 sps:$4 sm:$0xff]   ;;  %v187_v7 = vld [vmem:[#allocation4] sm:$0xff] }
  0x59   :  { %333 = vmatprep.mubr.bf16.mxu1 %v1545_v0  ;;  %174 = vmatprep.mubr.bf16.mxu0 %v1545_v0  ;;  %v1261_v2 = vld [vmem:[%s1808_s4] ss:$24 sps:$4 sm:$0xff]   ;;  %v1262_v3 = vld [vmem:[%s1808_s4 + $0x34] ss:$24 sps:$4 sm:$0xff]   ;;  %v1264_v4 = vld [vmem:[%s1808_s4 + $0x30] ss:$24 sps:$4 sm:$0xff]   ;;  %v1691_v9 = vpack.c.bf16 %v187_v7, %v187_v7 }
  0x5a   :  { %301 = vmatprep.subr.bf16.mxu1 %v1259_v1  ;;  %v1265_v5 = vld [vmem:[%s1808_s4 + $0x64] ss:$24 sps:$4 sm:$0xff]   ;;  %v1267_v6 = vld [vmem:[%s1808_s4 + $0x60] ss:$24 sps:$4 sm:$0xff]   ;;  %vm297_vm0 = vcmask 392192   ;;  %vm138_vm1 = vcmask 261120  }
  0x5b   :  { %302 = vmatpush1.bf16.msra.mxu1 %v1261_v2  ;;  %v1270_v8 = vld [vmem:[%s1808_s4 + $0xc] ss:$24 sps:$4 sm:$0xff]   ;;  %v1268_v10 = vld [vmem:[%s1808_s4 + $0x8] ss:$24 sps:$4 sm:$0xff]   ;;  %v1273_v11 = vld [vmem:[%s1808_s4 + $0x3c] ss:$24 sps:$4 sm:$0xff]  }
  0x5c   :  { %303 = vmatprep.subr.bf16.mxu1 %v1262_v3  ;;  %v1286_v12 = vld [vmem:[#allocation6 + $0x4] ss:$8 sps:$4 sm:$0xff]   ;;  %v1288_v13 = vld [vmem:[#allocation6] ss:$8 sps:$4 sm:$0xff]   ;;  %v1289_v14 = vld [vmem:[#allocation6 + $0x14] ss:$8 sps:$4 sm:$0xff]  }
  0x5d   :  { %v1271_v15 = vld [vmem:[%s1808_s4 + $0x38] ss:$24 sps:$4 sm:$0xff]   ;;  %v1276_v16 = vld [vmem:[%s1808_s4 + $0x6c] ss:$24 sps:$4 sm:$0xff]   ;;  %142 = vmatprep.subr.bf16.mxu0 %v1286_v12  ;;  %v1291_v17 = vld [vmem:[#allocation6 + $0x10] ss:$8 sps:$4 sm:$0xff]  }
  0x5e   :  { %143 = vmatpush1.bf16.msra.mxu0 %v1288_v13  ;;  %v100_v18 = vld [vmem:[#allocation2] sm:$0xff]  ;;  %v1300_v20 = vld [vmem:[#allocation9 + $0x4] ss:$8 sps:$4 sm:$0xff]   ;;  %v1298_v23 = vld [vmem:[#allocation9] ss:$8 sps:$4 sm:$0xff]   ;;  %vm1113_vm2 = vcmask 39936  }
  0x5f   :  { %304 = vmatpush1.bf16.msra.mxu1 %v1264_v4  ;;  %v1274_v19 = vld [vmem:[%s1808_s4 + $0x68] ss:$24 sps:$4 sm:$0xff]   ;;  %144 = vmatprep.subr.bf16.mxu0 %v1289_v14  ;;  %v1279_v21 = vld [vmem:[%s1808_s4 + $0x14] ss:$24 sps:$4 sm:$0xff]   ;;  %v101_v22 = vpack.c.bf16 %v100_v18, %v100_v18  ;;  %v1282_v26 = vld [vmem:[%s1808_s4 + $0x44] ss:$24 sps:$4 sm:$0xff]  }
  0x60   :  { %305 = vmatprep.subr.bf16.mxu1 %v1265_v5  ;;  %v1306_v24 = vld [vmem:[#allocation9 + $0x14] ss:$8 sps:$4 sm:$0xff]   ;;  %v1277_v25 = vld [vmem:[%s1808_s4 + $0x10] ss:$24 sps:$4 sm:$0xff]   ;;  %v1280_v27 = vld [vmem:[%s1808_s4 + $0x40] ss:$24 sps:$4 sm:$0xff]  }
  0x61   :  { %v1304_v28 = vld [vmem:[#allocation9 + $0x10] ss:$8 sps:$4 sm:$0xff]   ;;  %v1312_v29 = vld [vmem:[#allocation9 + $0x24] ss:$8 sps:$4 sm:$0xff]   ;;  %v1310_v31 = vld [vmem:[#allocation9 + $0x20] ss:$8 sps:$4 sm:$0xff]  }
  0x62   :  { %145 = vmatpush1.bf16.msra.mxu0 %v1291_v17  ;;  %v1285_v30 = vld [vmem:[%s1808_s4 + $0x74] ss:$24 sps:$4 sm:$0xff]   ;;  %v1283_v33 = vld [vmem:[%s1808_s4 + $0x70] ss:$24 sps:$4 sm:$0xff]  }
  0x63   :  { %306 = vmatpush1.bf16.msra.mxu1 %v1267_v6  ;;  %674 = vmatprep.subr.bf16.mxu0 %v1300_v20  ;;  %v1318_v32 = vld [vmem:[#allocation9 + $0x34] ss:$8 sps:$4 sm:$0xff]   ;;  %v1294_v34 = vld [vmem:[#allocation7 + $0x4] ss:$8 sps:$4 sm:$0xff]   ;;  %v1316_v35 = vld [vmem:[#allocation9 + $0x30] ss:$8 sps:$4 sm:$0xff]  }
  0x64   :  { %342 = vmatprep.subr.bf16.mxu1 %v1270_v8  ;;  %v1292_v36 = vld [vmem:[#allocation7] ss:$8 sps:$4 sm:$0xff]   ;;  %v1297_v37 = vld [vmem:[#allocation7 + $0x14] ss:$8 sps:$4 sm:$0xff]   ;;  %v1295_v38 = vld [vmem:[#allocation7 + $0x10] ss:$8 sps:$4 sm:$0xff]  }
  0x65   :  { %1126 = vmatmul.mubr.msk.bf16.vlgmr.msra.gmra.mrb[0].mxu0 %vm138_vm1, %v101_v22  ;;  %v1303_v39 = vld [vmem:[#allocation7 + $0x24] ss:$8 sps:$4 sm:$0xff]   ;;  %v1301_v40 = vld [vmem:[#allocation7 + $0x20] ss:$8 sps:$4 sm:$0xff]   ;;  %v1309_v41 = vld [vmem:[#allocation7 + $0x34] ss:$8 sps:$4 sm:$0xff]  }
  0x66   :  { %1145 = vmatmul.mubr.msk.bf16.vlgmr.msra.gmra.mrb[0].mxu1 %vm297_vm0, %v1691_v9  ;;  %675 = vmatpush1.bf16.msra.mxu0 %v1298_v23  ;;  %v1307_v42 = vld [vmem:[#allocation7 + $0x30] ss:$8 sps:$4 sm:$0xff]   ;;  %v1315_v43 = vld [vmem:[#allocation7 + $0x44] ss:$8 sps:$4 sm:$0xff]   ;;  %v1313_v44 = vld [vmem:[#allocation7 + $0x40] ss:$8 sps:$4 sm:$0xff]  }
  0x67   :  { %343 = vmatpush1.bf16.msra.mxu1 %v1268_v10  ;;  %374 = vmatprep.mubr.bf16.mxu1 %v1545_v0  ;;  %v1321_v45 = vld [vmem:[#allocation7 + $0x54] ss:$8 sps:$4 sm:$0xff]   ;;  %v1319_v46 = vld [vmem:[#allocation7 + $0x50] ss:$8 sps:$4 sm:$0xff]   ;;  %v1324_v47 = vld [vmem:[#allocation9 + $0x44] ss:$8 sps:$4 sm:$0xff]  }
  0x68   :  { %344 = vmatprep.subr.bf16.mxu1 %v1273_v11  ;;  %676 = vmatprep.subr.bf16.mxu0 %v1306_v24  ;;  %v1322_v48 = vld [vmem:[#allocation9 + $0x40] ss:$8 sps:$4 sm:$0xff]   ;;  %v1327_v49 = vld [vmem:[#allocation7 + $0x64] ss:$8 sps:$4 sm:$0xff]   ;;  %v1330_v51 = vld [vmem:[#allocation9 + $0x54] ss:$8 sps:$4 sm:$0xff]  }
  0x69   :  { %v1325_v50 = vld [vmem:[#allocation7 + $0x60] ss:$8 sps:$4 sm:$0xff]   ;;  %v1328_v52 = vld [vmem:[#allocation9 + $0x50] ss:$8 sps:$4 sm:$0xff]   ;;  %v1333_v53 = vld [vmem:[#allocation7 + $0x74] ss:$8 sps:$4 sm:$0xff]  }
  0x6a   :  { %677 = vmatpush1.bf16.msra.mxu0 %v1304_v28  ;;  %v1331_v54 = vld [vmem:[#allocation7 + $0x70] ss:$8 sps:$4 sm:$0xff]   ;;  %v1336_v55 = vld [vmem:[#allocation9 + $0x64] ss:$8 sps:$4 sm:$0xff]   ;;  %v1334_v56 = vld [vmem:[#allocation9 + $0x60] ss:$8 sps:$4 sm:$0xff]   ;;  %v108_v28 = vlaneseq }
  0x6b   :  { %345 = vmatpush1.bf16.msra.mxu1 %v1271_v15  ;;  %678 = vmatprep.subr.bf16.mxu0 %v1312_v29  ;;  %v1339_v57 = vld [vmem:[#allocation7 + $0x84] ss:$8 sps:$4 sm:$0xff]   ;;  %v1337_v58 = vld [vmem:[#allocation7 + $0x80] ss:$8 sps:$4 sm:$0xff]   ;;  %v1342_v59 = vld [vmem:[#allocation9 + $0x74] ss:$8 sps:$4 sm:$0xff]  }
  0x6c   :  { %346 = vmatprep.subr.bf16.mxu1 %v1276_v16  ;;  %v1340_v60 = vld [vmem:[#allocation9 + $0x70] ss:$8 sps:$4 sm:$0xff]   ;;  %v1345_v61 = vld [vmem:[#allocation7 + $0x94] ss:$8 sps:$4 sm:$0xff]   ;;  %v1348_v63 = vld [vmem:[#allocation9 + $0x84] ss:$8 sps:$4 sm:$0xff]  }
  0x6d   :  { %v1343_v62 = vld [vmem:[#allocation7 + $0x90] ss:$8 sps:$4 sm:$0xff]   ;;  %v1351_v1 = vld [vmem:[#allocation7 + $0xa4] ss:$8 sps:$4 sm:$0xff]   ;;  %v1349_v2 = vld [vmem:[#allocation7 + $0xa0] ss:$8 sps:$4 sm:$0xff]  }
  0x6e   :  { %679 = vmatpush1.bf16.msra.mxu0 %v1310_v31  ;;  %v1354_v3 = vld [vmem:[#allocation9 + $0x94] ss:$8 sps:$4 sm:$0xff]   ;;  %v1352_v4 = vld [vmem:[#allocation9 + $0x90] ss:$8 sps:$4 sm:$0xff]   ;;  %v1360_v7 = vld [vmem:[#allocation9 + $0xa4] ss:$8 sps:$4 sm:$0xff]  }
  0x6f   :  { %347 = vmatpush1.bf16.msra.mxu1 %v1274_v19  ;;  %680 = vmatprep.subr.bf16.mxu0 %v1318_v32  ;;  %v1357_v5 = vld [vmem:[#allocation7 + $0xb4] ss:$8 sps:$4 sm:$0xff]   ;;  %v1355_v6 = vld [vmem:[#allocation7 + $0xb0] ss:$8 sps:$4 sm:$0xff]   ;;  %v1358_v8 = vld [vmem:[#allocation9 + $0xa0] ss:$8 sps:$4 sm:$0xff]  }
  0x70   :  { %383 = vmatprep.subr.bf16.mxu1 %v1279_v21  ;;  %v1361_v10 = vld [vmem:[#allocation7 + $0xc0] ss:$8 sps:$4 sm:$0xff]   ;;  %v1366_v11 = vld [vmem:[#allocation9 + $0xb4] ss:$8 sps:$4 sm:$0xff]   ;;  %v1364_v12 = vld [vmem:[#allocation9 + $0xb0] ss:$8 sps:$4 sm:$0xff]  }
  0x71   :  { %v1369_v13 = vld [vmem:[#allocation7 + $0xd4] ss:$8 sps:$4 sm:$0xff]   ;;  %v1367_v14 = vld [vmem:[#allocation7 + $0xd0] ss:$8 sps:$4 sm:$0xff]   ;;  %v1372_v15 = vld [vmem:[#allocation9 + $0xc4] ss:$8 sps:$4 sm:$0xff]  }
  0x72   :  { %1146 = vmatmul.mubr.msk.bf16.vlgmr.msra.gmra.mrb[4].mxu1 %vm297_vm0, %v1691_v9  ;;  %681 = vmatpush1.bf16.msra.mxu0 %v1316_v35  ;;  %v1370_v16 = vld [vmem:[#allocation9 + $0xc0] ss:$8 sps:$4 sm:$0xff]   ;;  %v1375_v17 = vld [vmem:[#allocation7 + $0xe4] ss:$8 sps:$4 sm:$0xff]   ;;  %v1378_v19 = vld [vmem:[#allocation9 + $0xd4] ss:$8 sps:$4 sm:$0xff]  }
  0x73   :  { %384 = vmatpush1.bf16.msra.mxu1 %v1277_v25  ;;  %415 = vmatprep.mubr.bf16.mxu1 %v1545_v0  ;;  %v1346_v0 = vld [vmem:[#allocation9 + $0x80] ss:$8 sps:$4 sm:$0xff]   ;;  %v1376_v20 = vld [vmem:[#allocation9 + $0xd0] ss:$8 sps:$4 sm:$0xff]   ;;  %v1381_v21 = vld [vmem:[#allocation7 + $0xf4] ss:$8 sps:$4 sm:$0xff]  }
  0x74   :  { %385 = vmatprep.subr.bf16.mxu1 %v1282_v26  ;;  %682 = vmatprep.subr.bf16.mxu0 %v1324_v47  ;;  %v1373_v18 = vld [vmem:[#allocation7 + $0xe0] ss:$8 sps:$4 sm:$0xff]   ;;  %v1379_v22 = vld [vmem:[#allocation7 + $0xf0] ss:$8 sps:$4 sm:$0xff]   ;;  %v1384_v23 = vld [vmem:[#allocation9 + $0xe4] ss:$8 sps:$4 sm:$0xff]  }
  0x75   :  { %v1382_v24 = vld [vmem:[#allocation9 + $0xe0] ss:$8 sps:$4 sm:$0xff]   ;;  %v1387_v25 = vld [vmem:[#allocation9 + $0xf4] ss:$8 sps:$4 sm:$0xff]   ;;  %v1385_v26 = vld [vmem:[#allocation9 + $0xf0] ss:$8 sps:$4 sm:$0xff]  }
  0x76   :  { %683 = vmatpush1.bf16.msra.mxu0 %v1322_v48  ;;  %v1735_v29 = vshrl.u32 %v108_v28, 7  ;;  %v1398_v28 = vld [vmem:[%s1812_s8 + $0x68] sm:$0xff]  }
  0x77   :  { %386 = vmatpush1.bf16.msra.mxu1 %v1280_v27  ;;  %684 = vmatprep.subr.bf16.mxu0 %v1330_v51  ;;  %v1388_v27 = vld [vmem:[%s1812_s8 + $0x40] sm:$0xff]  }
  0x78   :  { %387 = vmatprep.subr.bf16.mxu1 %v1285_v30 }
  0x7a   :  { %685 = vmatpush1.bf16.msra.mxu0 %v1328_v52 }
  0x7b   :  { %388 = vmatpush1.bf16.msra.mxu1 %v1283_v33  ;;  %686 = vmatprep.subr.bf16.mxu0 %v1336_v55 }
  0x7c   :  { %875 = vmatprep.subr.bf16.mxu1 %v1294_v34 }
  0x7e   :  { %1147 = vmatmul.mubr.msk.bf16.vlgmr.msra.gmra.mrb[8].mxu1 %vm297_vm0, %v1691_v9  ;;  %687 = vmatpush1.bf16.msra.mxu0 %v1334_v56  ;;  %v1363_v9 = vld [vmem:[#allocation7 + $0xc4] ss:$8 sps:$4 sm:$0xff]  }
  0x7f   :  { %876 = vmatpush1.bf16.msra.mxu1 %v1292_v36  ;;  %688 = vmatprep.subr.bf16.mxu0 %v1342_v59  ;;  %v110_v36 = vsub.s32 0, %v1735_v29 }
  0x80   :  { %877 = vmatprep.subr.bf16.mxu1 %v1297_v37  ;;  %v106_v37 = vld [vmem:[%s1807_s3] sm:$0x3] }
  0x82   :  { %689 = vmatpush1.bf16.msra.mxu0 %v1340_v60 }
  0x83   :  { %878 = vmatpush1.bf16.msra.mxu1 %v1295_v38  ;;  %690 = vmatprep.subr.bf16.mxu0 %v1348_v63  ;;  %v114_v38 = vsub.s32 1, %v1735_v29 }
  0x84   :  { %879 = vmatprep.subr.bf16.mxu1 %v1303_v39  ;;  %v111_v39 = vrot.slane %v106_v37, %v110_v36 }
  0x86   :  { %691 = vmatpush1.bf16.msra.mxu0 %v1346_v0 }
  0x87   :  { %880 = vmatpush1.bf16.msra.mxu1 %v1301_v40  ;;  %692 = vmatprep.subr.bf16.mxu0 %v1354_v3  ;;  %v115_v40 = vrot.slane %v106_v37, %v114_v38 }
  0x88   :  { %881 = vmatprep.subr.bf16.mxu1 %v1309_v41 }
  0x8a   :  { %693 = vmatpush1.bf16.msra.mxu0 %v1352_v4 }
  0x8b   :  { %882 = vmatpush1.bf16.msra.mxu1 %v1307_v42  ;;  %694 = vmatprep.subr.bf16.mxu0 %v1360_v7 }
  0x8c   :  { %883 = vmatprep.subr.bf16.mxu1 %v1315_v43 }
  0x8e   :  { %695 = vmatpush1.bf16.msra.mxu0 %v1358_v8 }
  0x8f   :  { %884 = vmatpush1.bf16.msra.mxu1 %v1313_v44  ;;  %696 = vmatprep.subr.bf16.mxu0 %v1366_v11 }
  0x90   :  { %885 = vmatprep.subr.bf16.mxu1 %v1321_v45 }
  0x92   :  { %697 = vmatpush1.bf16.msra.mxu0 %v1364_v12 }
  0x93   :  { %886 = vmatpush1.bf16.msra.mxu1 %v1319_v46  ;;  %698 = vmatprep.subr.bf16.mxu0 %v1372_v15 }
  0x94   :  { %887 = vmatprep.subr.bf16.mxu1 %v1327_v49 }
  0x96   :  { %699 = vmatpush1.bf16.msra.mxu0 %v1370_v16 }
  0x97   :  { %888 = vmatpush1.bf16.msra.mxu1 %v1325_v50  ;;  %700 = vmatprep.subr.bf16.mxu0 %v1378_v19 }
  0x98   :  { %889 = vmatprep.subr.bf16.mxu1 %v1333_v53 }
  0x9a   :  { %701 = vmatpush1.bf16.msra.mxu0 %v1376_v20  ;;  %v1390_v20 = vld [vmem:[%s1812_s8 + $0x48] sm:$0xff]  }
  0x9b   :  { %890 = vmatpush1.bf16.msra.mxu1 %v1331_v54  ;;  %702 = vmatprep.subr.bf16.mxu0 %v1384_v23  ;;  %v1393_v23 = vld [vmem:[%s1812_s8 + $0x10] sm:$0xff]  }
  0x9c   :  { %891 = vmatprep.subr.bf16.mxu1 %v1339_v57 }
  0x9e   :  { %703 = vmatpush1.bf16.msra.mxu0 %v1382_v24  ;;  %v1394_v24 = vld [vmem:[%s1812_s8 + $0x58] sm:$0xff]  }
  0x9f   :  { %892 = vmatpush1.bf16.msra.mxu1 %v1337_v58  ;;  %704 = vmatprep.subr.bf16.mxu0 %v1387_v25  ;;  %v1395_v25 = vld [vmem:[%s1812_s8 + $0x18] sm:$0xff]  }
  0xa0   :  { %893 = vmatprep.subr.bf16.mxu1 %v1345_v61 }
  0xa2   :  { %705 = vmatpush1.bf16.msra.mxu0 %v1385_v26  ;;  %v1396_v26 = vld [vmem:[%s1812_s8 + $0x60] sm:$0xff]  }
  0xa3   :  { %894 = vmatpush1.bf16.msra.mxu1 %v1343_v62  ;;  %1229 = vmatprep.subr.bf16.mxu0 %v1388_v27  ;;  %v1397_v27 = vld [vmem:[%s1812_s8 + $0x20] sm:$0xff]  }
  0xa4   :  { %895 = vmatprep.subr.bf16.mxu1 %v1351_v1 }
  0xa7   :  { %896 = vmatpush1.bf16.msra.mxu1 %v1349_v2 }
  0xa8   :  { %897 = vmatprep.subr.bf16.mxu1 %v1357_v5 }
  0xab   :  { %898 = vmatpush1.bf16.msra.mxu1 %v1355_v6 }
  0xac   :  { %899 = vmatprep.subr.bf16.mxu1 %v1363_v9 }
  0xaf   :  { %900 = vmatpush1.bf16.msra.mxu1 %v1361_v10 }
  0xb0   :  { %901 = vmatprep.subr.bf16.mxu1 %v1369_v13 }
  0xb3   :  { %902 = vmatpush1.bf16.msra.mxu1 %v1367_v14 }
  0xb4   :  { %903 = vmatprep.subr.bf16.mxu1 %v1375_v17 }
  0xb7   :  { %904 = vmatpush1.bf16.msra.mxu1 %v1373_v18  ;;  %v1389_v18 = vld [vmem:[%s1812_s8] sm:$0xff]  }
  0xb8   :  { %905 = vmatprep.subr.bf16.mxu1 %v1381_v21  ;;  %v1391_v21 = vld [vmem:[%s1812_s8 + $0x8] sm:$0xff]  }
  0xbb   :  { %906 = vmatpush1.bf16.msra.mxu1 %v1379_v22  ;;  %v1392_v22 = vld [vmem:[%s1812_s8 + $0x50] sm:$0xff]  }
 0x138   :  { %v176_v41 = vpop.f32.mrb[0].mxu0 }
 0x139   :  { %v335_v30 = vpop.f32.mrb[0].mxu1  ;;  %v177_v42 = vadd.f32 %v176_v41, %v111_v39  ;;  %v178_v43 = vpop.f32.mrb[1].mxu0  ;;  %v916_v41 = vld [vmem:[%s1811_s7] sm:$0x3] }
 0x13a   :  { %v424_v31 = vmul.f32 0.5, %v335_v30  ;;  %v337_v32 = vpop.f32.mrb[1].mxu1  ;;  %v179_v45 = vadd.f32 %v178_v43, %v115_v40  ;;  %v180_v46 = vpop.f32.mrb[2].mxu0  ;;  %v1399_v30 = vld [vmem:[%s1812_s8 + $0x28] sm:$0xff]  }
 0x13b   :  { %v425_v33 = vmul.f32 0.5, %v337_v32  ;;  %v339_v34 = vpop.f32.mrb[2].mxu1  ;;  %v183_v48 = vmax.f32 %v177_v42, 0.0  ;;  %v181_v49 = vpop.f32.mrb[3].mxu0  ;;  %v1401_v32 = vld [vmem:[%s1812_s8 + $0x30] sm:$0xff]   ;;  %v921_v42 = vrot.slane %v916_v41, %v110_v36 }
 0x13c   :  { %v340_v35 = vpop.f32.mrb[3].mxu1  ;;  %1404 = vtanh.f32 %v424_v31  ;;  %v184_v51 = vmax.f32 %v179_v45, 0.0  ;;  %v1400_v31 = vld [vmem:[%s1812_s8 + $0x70] sm:$0xff]   ;;  %v1403_v34 = vld [vmem:[%s1812_s8 + $0x38] sm:$0xff]   ;;  %v1212_v36 = vld [vmem:[%s1813_s9] ss:$0 sm:$0xff] }
 0x13d   :  { %1406 = vtanh.f32 %v425_v33  ;;  %v185_v54 = vpack.c.bf16 %v183_v48, %v183_v48  ;;  %v1402_v33 = vld [vmem:[%s1812_s8 + $0x78] sm:$0xff]  }
 0x13e   :  { %v186_v56 = vpack.c.bf16 %v184_v51, %v184_v51 }
 0x140   :  { %907 = vmatprep.mubr.bf16.mxu1 %v186_v56 }
 0x141   :  { %908 = vmatmul.mubr.bf16.vlgmr.msra.gmra.mrb[12].mxu1 %v185_v54 }
 0x145   :  { %v376_v44 = vpop.f32.mrb[4].mxu1 }
 0x146   :  { %1408 = vtanh.f32 %v376_v44  ;;  %v378_v47 = vpop.f32.mrb[5].mxu1  ;;  %v1405_v52 = vpop.eup %1404  ;;  %v925_v44 = vrot.slane %v916_v41, %v114_v38 }
 0x147   :  { %1410 = vtanh.f32 %v378_v47  ;;  %v380_v50 = vpop.f32.mrb[6].mxu1  ;;  %v1407_v55 = vpop.eup %1406  ;;  %v428_v57 = vadd.f32 1.0, %v1405_v52 }
 0x148   :  { %v381_v53 = vpop.f32.mrb[7].mxu1  ;;  %v429_v58 = vadd.f32 1.0, %v1407_v55 }
 0x149   :  { %v430_v59 = vmul.f32 0.5, %v428_v57 }
 0x14a   :  { %v431_v61 = vmul.f32 0.5, %v429_v58 }
 0x150   :  { %v1409_v60 = vpop.eup %1408 }
 0x151   :  { %v1411_v62 = vpop.eup %1410  ;;  %v442_v63 = vmul.f32 %v1409_v60, %v430_v59  ;;  %v417_v0 = vpop.f32.mrb[8].mxu1 }
 0x152   :  { %v443_v1 = vmul.f32 %v1411_v62, %v431_v61  ;;  %v434_v2 = vmul.f32 0.5, %v417_v0  ;;  %v419_v3 = vpop.f32.mrb[9].mxu1 }
 0x153   :  { %v435_v4 = vmul.f32 0.5, %v419_v3  ;;  %v421_v5 = vpop.f32.mrb[10].mxu1 }
 0x154   :  { %v422_v6 = vpop.f32.mrb[11].mxu1  ;;  %1412 = vtanh.f32 %v434_v2 }
 0x155   :  { %1414 = vtanh.f32 %v435_v4 }
 0x156   :  { %1416 = vtanh.f32 %v442_v63 }
 0x157   :  { %1418 = vtanh.f32 %v443_v1 }
 0x15e   :  { %v1413_v7 = vpop.eup %1412 }
 0x15f   :  { %v1415_v8 = vpop.eup %1414  ;;  %v438_v9 = vadd.f32 1.0, %v1413_v7 }
 0x160   :  { %v439_v10 = vadd.f32 1.0, %v1415_v8  ;;  %v1417_v12 = vpop.eup %1416 }
 0x161   :  { %v440_v11 = vmul.f32 0.5, %v438_v9  ;;  %v1419_v14 = vpop.eup %1418 }
 0x162   :  { %v441_v13 = vmul.f32 0.5, %v439_v10 }
 0x163   :  { %v446_v15 = vmul.f32 %v1417_v12, %v440_v11 }
 0x164   :  { %v447_v16 = vmul.f32 %v1419_v14, %v441_v13 }
 0x165   :  { %v448_v19 = vpack.c.bf16 %v446_v15, %v446_v15 }
 0x166   :  { %v449_v17 = vpack.c.bf16 %v447_v16, %v447_v16 }
 0x168   :  { %706 = vmatprep.mubr.bf16.mxu0 %v449_v17 }
 0x169   :  { %707 = vmatmul.mubr.bf16.vlgmr.msra.gmra.mrb[4].mxu0 %v448_v19 }
 0x16a   :  { %1230 = vmatpush3.bf16.msra.mxu0 %v1389_v18 }
 0x16b   :  { %1231 = vmatprep.subr.bf16.mxu0 %v1390_v20 }
 0x16e   :  { %1232 = vmatpush3.bf16.msra.mxu0 %v1391_v21 }
 0x16f   :  { %1233 = vmatprep.subr.bf16.mxu0 %v1392_v22 }
 0x172   :  { %1234 = vmatpush3.bf16.msra.mxu0 %v1393_v23 }
 0x173   :  { %1235 = vmatprep.subr.bf16.mxu0 %v1394_v24 }
 0x176   :  { %1236 = vmatpush3.bf16.msra.mxu0 %v1395_v25 }
 0x177   :  { %1237 = vmatprep.subr.bf16.mxu0 %v1396_v26 }
 0x17a   :  { %1238 = vmatpush3.bf16.msra.mxu0 %v1397_v27 }
 0x17b   :  { %1239 = vmatprep.subr.bf16.mxu0 %v1398_v28 }
 0x17e   :  { %1240 = vmatpush3.bf16.msra.mxu0 %v1399_v30 }
 0x17f   :  { %1241 = vmatprep.subr.bf16.mxu0 %v1400_v31 }
 0x182   :  { %1242 = vmatpush3.bf16.msra.mxu0 %v1401_v32 }
 0x183   :  { %1243 = vmatprep.subr.bf16.mxu0 %v1402_v33 }
 0x186   :  { %1244 = vmatpush3.bf16.msra.mxu0 %v1403_v34 }
 0x214   :  { %v909_v35 = vpop.f32.mrb[12].mxu1 }
 0x215   :  { %v911_v37 = vpop.f32.mrb[13].mxu1 }
 0x216   :  { %v913_v39 = vpop.f32.mrb[14].mxu1 }
 0x217   :  { %v914_v40 = vpop.f32.mrb[15].mxu1 }
 0x23c   :  { %v708_v43 = vpop.f32.mrb[4].mxu0 }
 0x23d   :  { %v910_v45 = vadd.f32 %v909_v35, %v708_v43  ;;  %v710_v46 = vpop.f32.mrb[5].mxu0 }
 0x23e   :  { %v912_v47 = vadd.f32 %v911_v37, %v710_v46  ;;  %v712_v48 = vpop.f32.mrb[6].mxu0 }
 0x23f   :  { %v928_v49 = vadd.f32 %v921_v42, %v910_v45  ;;  %v713_v50 = vpop.f32.mrb[7].mxu0 }
 0x240   :  { %v929_v51 = vadd.f32 %v925_v44, %v912_v47 }
 0x241   :  { %v930_v52 = vmax.f32 %v928_v49, 0.0 }
 0x242   :  { %v931_v53 = vmax.f32 %v929_v51, 0.0 }
 0x243   :  { %v932_v55 = vpack.c.bf16 %v930_v52, %v930_v52 }
 0x244   :  { %v933_v54 = vpack.c.bf16 %v931_v53, %v931_v53 }
 0x246   :  { %1101 = vmatprep.mubr.bf16.mxu0 %v933_v54 }
 0x247   :  { %1102 = vmatmul.mubr.bf16.vlgmr.msra.gmra.mrb[8].mxu0 %v932_v55 }
 0x31a   :  { %v1245_v56 = vpop.f32.mrb[8].mxu0 }
 0x31b   :  { %v1246_v29 = vpop.f32.mrb[9].mxu0 }
 0x31c   :  { %v1247_v38 = vadd.f32 %v1246_v29, %v1245_v56  ;;  %v1248_v57 = vpop.f32.mrb[10].mxu0 }
 0x31d   :  { %v1249_v58 = vpop.f32.mrb[11].mxu0 }
 0x31e   :  { %v1104_v59 = vadd.f32 %v1247_v38, %v1212_v36 }
 0x320   :  { %v1109_v60 = vmul.f32 0.5, %v1104_v59 }
 0x322   :  { %1420 = vtanh.f32 %v1109_v60 }
 0x32c   :  { %v1421_v61 = vpop.eup %1420 }
 0x32d   :  { %v1111_v62 = vadd.f32 1.0, %v1421_v61 }
 0x32f   :  { %v1112_v63 = vmul.f32 0.5, %v1111_v62 }
 0x331   :  { %1114 = vst.msk [vmem:[%s1814_s10] sm:$0xff] %vm1113_vm2, %v1112_v63 }
 0x332   :  { %1119 = vsyncpa [#allocation3], 1 }
 0x333   :  { %1120 = vsyncpa [#allocation5], 1 }
 0x334   :  { %1121 = vsyncpa [#allocation8], 1 }

</bundles_post_ra>
